<compile_context>
chip_gen: v5e
topology: v5e:2x2
jax: 0.10.0
libtpu: 0.0.40
codegen_flags: <defaults>
</compile_context>

<pallas_src>
import functools
import math

import jax
import jax.numpy as jnp
from jax import lax
from jax.experimental import pallas as pl
from jax.experimental.pallas import tpu as pltpu

# ---------------- synthesized-module hyperparameters ----------------
IN_CHANNELS = 37
ENC_OUT = 64
H_NUM = 8                 # number of sine harmonics in Harmonic
N_HARM_FILTERS = 5        # HnNSF has 5 harmonic SimpleFilter(depth=10)
HARM_DEPTH = 10
NOISE_DEPTH = 5           # noise SimpleFilter(depth=5)
COND_ROWS = N_HARM_FILTERS * HARM_DEPTH + NOISE_DEPTH   # 55 conditioning rows
SINE_AMP = 0.1
NOISE_STD = 0.003

FRAMES_PER_TILE = 128     # frames per grid step (lane dim of the sample kernel)


# ---------------------------------------------------------------------------
# Kernel 1: fused encoder + conditioning projection, at FRAME rate.
#   cond[:, n] = wc @ tanh(enc_w @ x[:, n] + enc_b) + bc
# Batch is folded into the matmul N dimension (x is (37, B*T) padded to 128).
# ---------------------------------------------------------------------------
def encoder_cond_kernel(x_ref, ew_ref, eb_ref, wc_ref, bc_ref, o_ref):
    enc = jnp.tanh(
        jnp.dot(ew_ref[...], x_ref[...], preferred_element_type=jnp.float32)
        + eb_ref[...])
    o_ref[...] = (
        jnp.dot(wc_ref[...], enc, preferred_element_type=jnp.float32)
        + bc_ref[...])


# ---------------------------------------------------------------------------
# Kernel 2: sample-rate hot path.
# One grid step covers FRAMES_PER_TILE frames x hop_length samples per frame.
# The within-frame offset is processed in sublane chunks (lax.fori_loop) to
# bound register pressure; all per-sample state lives in registers.
# ---------------------------------------------------------------------------
def nsf_sample_kernel(f0_ref, pb_ref, pc_ref, dlo_ref, dhi_ref,
                      nh_ref, nz_ref, wm_ref, whh_ref, whn_ref, o_ref,
                      *, sample_rate, hop_length, chunk):
    f32 = jnp.float32
    n_chunks = hop_length // chunk

    # ---- frame-rate rows, chunk-invariant (B, 1, F) ----
    f0 = f0_ref[...]
    pb = pb_ref[...]
    uv = (f0 > 0.0).astype(f32)
    noise_amp = uv * NOISE_STD + (1.0 - uv) * (SINE_AMP / 3.0)
    wm_norm = wm_ref[H_NUM, 0]                 # precomputed ||wm||_2 (SMEM)
    h_noise_amp = noise_amp * wm_norm
    sine_gain = uv * SINE_AMP
    inv_sr = 1.0 / float(sample_rate)

    base_m = lax.broadcasted_iota(f32, (1, chunk, 1), 1)    # 0..chunk-1

    def chunk_body(ci, carry):
        m0 = ci * chunk
        if chunk % 8 == 0:
            m0 = pl.multiple_of(m0, 8)
        m = base_m + (ci * chunk).astype(f32)               # within-frame offset
        # linear-upsample (align_corners=False) weights, depend only on m
        u = (m + 0.5) * (1.0 / float(hop_length)) - 0.5     # in (-0.5, 0.5)
        u_neg = jnp.minimum(u, 0.0)
        u_pos = jnp.maximum(u, 0.0)

        # ---- Harmonic: sine-harmonic source + linear merge + tanh ----
        rad = pb + (m + 1.0) * inv_sr * f0                  # (B, chunk, F)
        phase = (2.0 * math.pi) * rad
        s_sin = wm_ref[0, 0] * jnp.sin(phase)
        for k in range(1, H_NUM):
            s_sin = s_sin + wm_ref[k, 0] * jnp.sin(phase * float(k + 1))
        # Merging H iid N(0,1) noises with weights wm == one gaussian with
        # std ||wm||_2, so a single pre-drawn field preserves the distribution.
        nh = nh_ref[:, pl.ds(m0, chunk), :]
        h = jnp.tanh(s_sin * sine_gain + nh * h_noise_amp)

        # ---- 5 harmonic SimpleFilters (depth 10), conditioned on cond ----
        for fi in range(N_HARM_FILTERS):
            for d in range(HARM_DEPTH):
                r = fi * HARM_DEPTH + d
                c = (pc_ref[:, r:r + 1, :]
                     + u_neg * dlo_ref[:, r:r + 1, :]
                     + u_pos * dhi_ref[:, r:r + 1, :])
                h = h + 0.1 * jnp.tanh(whh_ref[fi, d] * h + c)

        # ---- Noise source + noise SimpleFilter (depth 5) ----
        n = nz_ref[:, pl.ds(m0, chunk), :] * (SINE_AMP / 3.0)
        for d in range(NOISE_DEPTH):
            r = N_HARM_FILTERS * HARM_DEPTH + d
            c = (pc_ref[:, r:r + 1, :]
                 + u_neg * dlo_ref[:, r:r + 1, :]
                 + u_pos * dhi_ref[:, r:r + 1, :])
            n = n + 0.1 * jnp.tanh(whn_ref[d, 0] * n + c)

        # ---- Sum: uv-gated combine ----
        o_ref[:, pl.ds(m0, chunk), :] = jnp.tanh(uv * h + n)
        return carry

    lax.fori_loop(0, n_chunks, chunk_body, 0)


# ---------------------------------------------------------------------------
# glue (plain JAX)
# ---------------------------------------------------------------------------
def _pick_chunk(hop, batch):
    """Largest sublane chunk (multiple of 8, divides hop) with <=8 vregs/value."""
    best = None
    for c in range(8, hop + 1, 8):
        if hop % c == 0 and batch * c <= 64:
            best = c
    return best if best is not None else hop


def init_params(key):
    ks = jax.random.split(key, 5)
    s = 0.1
    return dict(
        input_mean=jnp.zeros((1, IN_CHANNELS, 1), jnp.float32),
        input_std=jnp.ones((1, IN_CHANNELS, 1), jnp.float32),
        enc_w=s * jax.random.normal(ks[0], (ENC_OUT, IN_CHANNELS), jnp.float32),
        enc_b=jnp.zeros((ENC_OUT, 1), jnp.float32),
        harm_merge_w=s * jax.random.normal(ks[1], (H_NUM, 1), jnp.float32),
        wc_all=s * jax.random.normal(ks[2], (COND_ROWS, ENC_OUT), jnp.float32),
        bc_all=jnp.zeros((COND_ROWS, 1), jnp.float32),
        wh_harm=s * jax.random.normal(ks[3], (N_HARM_FILTERS, HARM_DEPTH), jnp.float32),
        wh_noise=s * jax.random.normal(ks[4], (NOISE_DEPTH, 1), jnp.float32),
    )


def hn_nsf_forward(x, params, *, sample_rate, hop_length=160, seed=0):
    """x: (B, 37, T) float32 -> waveform (B, 1, T*hop_length)."""
    B, C, T = x.shape
    assert C == IN_CHANNELS
    f32 = jnp.float32
    F = FRAMES_PER_TILE

    # f0 track (frame rate), taken from the raw input like the PyTorch module.
    f0 = x[:, -1, :].astype(f32)                               # (B, T)

    # input normalization (applied to all channels, incl. f0).
    x_norm = (x - params["input_mean"]) / params["input_std"]

    # ---- fused Encoder + conditioning projection at frame rate (Pallas) ----
    BT = B * T
    BT_pad = pl.cdiv(BT, 128) * 128
    xin = x_norm.transpose(1, 0, 2).reshape(C, BT)
    xin = jnp.pad(xin, ((0, 0), (0, BT_pad - BT)))
    cond_flat = pl.pallas_call(
        encoder_cond_kernel,
        out_shape=jax.ShapeDtypeStruct((COND_ROWS, BT_pad), f32),
        grid=(BT_pad // 128,),
        in_specs=[
            pl.BlockSpec((C, 128), lambda i: (0, i)),
            pl.BlockSpec((ENC_OUT, C), lambda i: (0, 0)),
            pl.BlockSpec((ENC_OUT, 1), lambda i: (0, 0)),
            pl.BlockSpec((COND_ROWS, ENC_OUT), lambda i: (0, 0)),
            pl.BlockSpec((COND_ROWS, 1), lambda i: (0, 0)),
        ],
        out_specs=pl.BlockSpec((COND_ROWS, 128), lambda i: (0, i)),
        compiler_params=pltpu.CompilerParams(dimension_semantics=("parallel",)),
    )(xin, params["enc_w"], params["enc_b"], params["wc_all"], params["bc_all"])
    cond = cond_flat[:, :BT].reshape(COND_ROWS, B, T).transpose(1, 0, 2)  # (B,55,T)

    # frame differences for in-kernel linear interpolation (edge replicate
    # reproduces align_corners=False clamping exactly).
    cond_prev = jnp.concatenate([cond[:, :, :1], cond[:, :, :-1]], axis=-1)
    cond_next = jnp.concatenate([cond[:, :, 1:], cond[:, :, -1:]], axis=-1)
    dlo = cond - cond_prev
    dhi = cond_next - cond

    # per-frame phase base: exclusive cumsum of hop*f0/sr (mod 1 per term keeps
    # the frame-rate accumulator small -> good fp32 phase precision).
    frame_inc = jnp.mod(f0 * (float(hop_length) / float(sample_rate)), 1.0)
    pb = jnp.mod(jnp.cumsum(frame_inc, axis=-1) - frame_inc, 1.0)          # (B,T)

    # pad the frame axis to a multiple of the per-tile frame count.
    T_pad = pl.cdiv(T, F) * F
    pad_t = ((0, 0), (0, 0), (0, T_pad - T))
    condp = jnp.pad(cond, pad_t)
    dlop = jnp.pad(dlo, pad_t)
    dhip = jnp.pad(dhi, pad_t)
    f0p = jnp.pad(f0, ((0, 0), (0, T_pad - T)))[:, None, :]                # (B,1,T_pad)
    pbp = jnp.pad(pb, ((0, 0), (0, T_pad - T)))[:, None, :]

    # gaussian noise fields (sample rate), laid out (B, within-frame, frame).
    kh, kz = jax.random.split(jax.random.PRNGKey(seed))
    noise_h = jax.random.normal(kh, (B, hop_length, T_pad), dtype=f32)
    noise_z = jax.random.normal(kz, (B, hop_length, T_pad), dtype=f32)

    # small scalar tables (SMEM inside the kernel); append ||wm||_2 to wm.
    wm = params["harm_merge_w"]
    wm_ext = jnp.concatenate(
        [wm, jnp.sqrt(jnp.sum(wm * wm)).reshape(1, 1)], axis=0)            # (H+1,1)

    chunk = _pick_chunk(hop_length, B)
    kernel = functools.partial(
        nsf_sample_kernel, sample_rate=sample_rate, hop_length=hop_length,
        chunk=chunk)

    out = pl.pallas_call(
        kernel,
        out_shape=jax.ShapeDtypeStruct((B, hop_length, T_pad), f32),
        grid=(T_pad // F,),
        in_specs=[
            pl.BlockSpec((B, 1, F), lambda t: (0, 0, t)),               # f0 frames
            pl.BlockSpec((B, 1, F), lambda t: (0, 0, t)),               # phase base
            pl.BlockSpec((B, COND_ROWS, F), lambda t: (0, 0, t)),       # cond
            pl.BlockSpec((B, COND_ROWS, F), lambda t: (0, 0, t)),       # dlo
            pl.BlockSpec((B, COND_ROWS, F), lambda t: (0, 0, t)),       # dhi
            pl.BlockSpec((B, hop_length, F), lambda t: (0, 0, t)),      # harm noise
            pl.BlockSpec((B, hop_length, F), lambda t: (0, 0, t)),      # noise branch
            pl.BlockSpec(memory_space=pltpu.MemorySpace.SMEM),          # wm_ext
            pl.BlockSpec(memory_space=pltpu.MemorySpace.SMEM),          # wh_harm
            pl.BlockSpec(memory_space=pltpu.MemorySpace.SMEM),          # wh_noise
        ],
        out_specs=pl.BlockSpec((B, hop_length, F), lambda t: (0, 0, t)),
        compiler_params=pltpu.CompilerParams(dimension_semantics=("parallel",)),
    )(f0p, pbp, condp, dlop, dhip, noise_h, noise_z,
      wm_ext, params["wh_harm"], params["wh_noise"])

    # (B, hop, T) -> (B, 1, T*hop)   (sample i = frame*hop + within-frame offset)
    wav = out[:, :, :T].transpose(0, 2, 1).reshape(B, 1, T * hop_length)
    return wav


if __name__ == "__main__":
    B, C, T = 2, IN_CHANNELS, 8
    hop_length = 160
    sample_rate = 16000

    key = jax.random.PRNGKey(0)
    x = jax.random.normal(key, (B, C, T), dtype=jnp.float32)
    # make the last channel look like an f0 track (Hz), half voiced / half unvoiced
    f0_track = jnp.where(jnp.arange(T) < T // 2, 220.0, 0.0).astype(jnp.float32)
    x = x.at[:, -1, :].set(f0_track[None, :])

    params = init_params(jax.random.PRNGKey(1))

    wav = hn_nsf_forward(x, params, sample_rate=sample_rate, hop_length=hop_length)
    wav = jax.block_until_ready(wav)
    assert wav.shape == (B, 1, T * hop_length), wav.shape
    assert bool(jnp.all(jnp.isfinite(wav)))
    print("KERNEL_OK")
</pallas_src>

<mosaic_0001>
module attributes {stable_mosaic.version = 11 : i64} {
  func.func @encoder_cond_kernel(%arg0: i32, %arg1: memref<37x128xf32, #tpu.memory_space<vmem>>, %arg2: memref<64x37xf32, #tpu.memory_space<vmem>>, %arg3: memref<64x1xf32, #tpu.memory_space<vmem>>, %arg4: memref<55x64xf32, #tpu.memory_space<vmem>>, %arg5: memref<55x1xf32, #tpu.memory_space<vmem>>, %arg6: memref<55x128xf32, #tpu.memory_space<vmem>>) attributes {dimension_semantics = [#tpu.dimension_semantics<parallel>], iteration_bounds = array<i64: 1>, scalar_prefetch = 0 : i64, scratch_operands = 0 : i64, tpu.core_type = #tpu.core_type<tc>, window_params = [{transform_indices = @transform_0, window_bounds = array<i64: 37, 128>}, {pipeline_mode = #tpu.pipeline_mode<synchronous>, transform_indices = @transform_1, window_bounds = array<i64: 64, 37>}, {pipeline_mode = #tpu.pipeline_mode<synchronous>, transform_indices = @transform_2, window_bounds = array<i64: 64, 1>}, {pipeline_mode = #tpu.pipeline_mode<synchronous>, transform_indices = @transform_3, window_bounds = array<i64: 55, 64>}, {pipeline_mode = #tpu.pipeline_mode<synchronous>, transform_indices = @transform_4, window_bounds = array<i64: 55, 1>}, {transform_indices = @transform_5, window_bounds = array<i64: 55, 128>}]} {
    %c0 = arith.constant 0 : index
    %c0_0 = arith.constant 0 : index
    %0 = vector.load %arg2[%c0, %c0_0] : memref<64x37xf32, #tpu.memory_space<vmem>>, vector<64x37xf32>
    %c0_1 = arith.constant 0 : index
    %c0_2 = arith.constant 0 : index
    %1 = vector.load %arg1[%c0_1, %c0_2] : memref<37x128xf32, #tpu.memory_space<vmem>>, vector<37x128xf32>
    %cst = arith.constant dense<0.000000e+00> : vector<64x128xf32>
    %2 = tpu.matmul %0, %1, %cst {dimension_numbers = #tpu.dot_dimension_numbers<[1], [0], [0], [1], [0, 0, 1, 1], [], []>} : vector<64x37xf32>, vector<37x128xf32>, vector<64x128xf32> -> vector<64x128xf32>
    %c0_3 = arith.constant 0 : index
    %c0_4 = arith.constant 0 : index
    %3 = vector.load %arg3[%c0_3, %c0_4] : memref<64x1xf32, #tpu.memory_space<vmem>>, vector<64x1xf32>
    %4 = vector.broadcast %3 : vector<64x1xf32> to vector<64x128xf32>
    %5 = arith.addf %2, %4 : vector<64x128xf32>
    %6 = math.tanh %5 : vector<64x128xf32>
    %c0_5 = arith.constant 0 : index
    %c0_6 = arith.constant 0 : index
    %7 = vector.load %arg4[%c0_5, %c0_6] : memref<55x64xf32, #tpu.memory_space<vmem>>, vector<55x64xf32>
    %cst_7 = arith.constant dense<0.000000e+00> : vector<55x128xf32>
    %8 = tpu.matmul %7, %6, %cst_7 {dimension_numbers = #tpu.dot_dimension_numbers<[1], [0], [0], [1], [0, 0, 1, 1], [], []>} : vector<55x64xf32>, vector<64x128xf32>, vector<55x128xf32> -> vector<55x128xf32>
    %c0_8 = arith.constant 0 : index
    %c0_9 = arith.constant 0 : index
    %9 = vector.load %arg5[%c0_8, %c0_9] : memref<55x1xf32, #tpu.memory_space<vmem>>, vector<55x1xf32>
    %10 = vector.broadcast %9 : vector<55x1xf32> to vector<55x128xf32>
    %11 = arith.addf %8, %10 : vector<55x128xf32>
    %c0_10 = arith.constant 0 : index
    %c0_11 = arith.constant 0 : index
    %12 = vector.load %arg6[%c0_10, %c0_11] : memref<55x128xf32, #tpu.memory_space<vmem>>, vector<55x128xf32>
    tpu.vector_store %arg6[%c0_10, %c0_11], %11 {strides = array<i32>} : memref<55x128xf32, #tpu.memory_space<vmem>>, vector<55x128xf32>,
    return
  }
  func.func @transform_0(%arg0: i32) -> (i32, i32) {
    %c0_i32 = arith.constant 0 : i32
    %c0_i32_0 = arith.constant 0 : i32
    return %c0_i32, %arg0 : i32, i32
  }
  func.func @transform_1(%arg0: i32) -> (i32, i32) {
    %c0_i32 = arith.constant 0 : i32
    %c0_i32_0 = arith.constant 0 : i32
    %c0_i32_1 = arith.constant 0 : i32
    return %c0_i32, %c0_i32_0 : i32, i32
  }
  func.func @transform_2(%arg0: i32) -> (i32, i32) {
    %c0_i32 = arith.constant 0 : i32
    %c0_i32_0 = arith.constant 0 : i32
    %c0_i32_1 = arith.constant 0 : i32
    return %c0_i32, %c0_i32_0 : i32, i32
  }
  func.func @transform_3(%arg0: i32) -> (i32, i32) {
    %c0_i32 = arith.constant 0 : i32
    %c0_i32_0 = arith.constant 0 : i32
    %c0_i32_1 = arith.constant 0 : i32
    return %c0_i32, %c0_i32_0 : i32, i32
  }
  func.func @transform_4(%arg0: i32) -> (i32, i32) {
    %c0_i32 = arith.constant 0 : i32
    %c0_i32_0 = arith.constant 0 : i32
    %c0_i32_1 = arith.constant 0 : i32
    return %c0_i32, %c0_i32_0 : i32, i32
  }
  func.func @transform_5(%arg0: i32) -> (i32, i32) {
    %c0_i32 = arith.constant 0 : i32
    %c0_i32_0 = arith.constant 0 : i32
    return %c0_i32, %arg0 : i32, i32
  }
}

</mosaic_0001>

<bundles_post_ra>
// kernel: tpu_custom_call.1
= control target key start
LH: loop header
LB: loop body
LE: loop exit
PB: predicated region body
PF: predicated region fallthrough
CT: control target
= control target key end

     0   :  { %vm107_vm0 = vcmask 1044480   ;;  %v372_v3 = vmov 0   ;;  %vm82_vm1 = vcmask 302080   ;;  %s529_s0 = inlined_call_operand.vmem [shape: f32[37,128], index: 0, kind: input, shape index: {}]   ;;  %s530_s1 = inlined_call_operand.vmem [shape: f32[64,37], index: 1, kind: input, shape index: {}]   ;;  %s531_s2 = inlined_call_operand.vmem [shape: f32[64,1], index: 2, kind: input, shape index: {}]   ;;  %s532_s3 = inlined_call_operand.vmem [shape: f32[55,64], index: 3, kind: input, shape index: {}]   ;;  %s533_s4 = inlined_call_operand.vmem [shape: f32[55,1], index: 4, kind: input, shape index: {}]   ;;  %s534_s5 = inlined_call_operand.hbm [shape: f32[55,128], index: 5, kind: output, shape index: {}]  }
   0x1   :  { %v33_v0 = vld [vmem:[%s529_s0 + $0x20] sm:$0x1f]  ;;  %v32_v1 = vld [vmem:[%s529_s0 + $0x18] sm:$0xff]  ;;  %v31_v2 = vld [vmem:[%s529_s0 + $0x10] sm:$0xff]  ;;  %327 = vset.pattern.permute.xlu0 %v372_v3  ;;  %328 = vset.pattern.permute.xlu1 %v372_v3 }
   0x2   :  { %310 = vmatpush.msk.msra.mxu2 %vm107_vm0, %v33_v0  ;;  %294 = vmatpush.msk.msra.mxu0 %vm107_vm0, %v33_v0  ;;  %v41_v4 = vld [vmem:[%s531_s2 + $0x38] sm:$0xff]  ;;  %v39_v5 = vld [vmem:[%s531_s2 + $0x28] sm:$0xff]  ;;  %v29_v7 = vld [vmem:[%s529_s0] sm:$0xff] }
   0x3   :  { %v30_v6 = vld [vmem:[%s529_s0 + $0x8] sm:$0xff]  ;;  %79 = vperm.xlu0 %327, %v41_v4   ;;  %69 = vperm.xlu1 %328, %v39_v5   ;;  %v25_v8 = vld [vmem:[%s530_s1 + $0x20] sm:$0xff]  ;;  %v37_v10 = vld [vmem:[%s531_s2 + $0x18] sm:$0xff] }
   0x4   :  { %311 = vmatpush.msra.mxu2 %v32_v1  ;;  %123 = vmatpush.msra.mxu0 %v32_v1  ;;  %v21_v9 = vld [vmem:[%s530_s1] sm:$0xff]  ;;  %v40_v11 = vld [vmem:[%s531_s2 + $0x30] sm:$0xff] }
   0x5   :  { %329 = vset.pattern.permute.xlu2 %v372_v3  ;;  %v38_v12 = vld [vmem:[%s531_s2 + $0x20] sm:$0xff] }
   0x6   :  { %312 = vmatpush.msra.mxu2 %v31_v2  ;;  %124 = vmatpush.msra.mxu0 %v31_v2 }
   0x7   :  { %59 = vperm.xlu2 %329, %v37_v10  }
   0x8   :  { %313 = vmatpush.msra.mxu2 %v30_v6  ;;  %125 = vmatpush.msra.mxu0 %v30_v6 }
   0xa   :  { %314 = vmatpush.msra.mxu2 %v29_v7  ;;  %126 = vmatpush.msra.mxu0 %v29_v7 }
   0xb   :  { %10 = vsyncpa [#allocation3], 0  ;;  %299 = vmatmul.msk.f32.vlgmr.msra.gmra.mxu2 %vm82_vm1, %v25_v8  ;;  %295 = vmatmul.msk.f32.vlgmr.msra.gmra.mxu0 %vm82_vm1, %v21_v9  ;;  %v36_v13 = vld [vmem:[%s531_s2 + $0x10] sm:$0xff]  ;;  %v26_v14 = vld [vmem:[%s530_s1 + $0x28] sm:$0xff]  ;;  %vm209_vm2 = vcmask 523264   ;;  %s282_s10 = sshll.u32 %s534_s5, 4  ;;  %s283_s10 = int_to_ptr.hbm [resolvable:$true] %s282_s10 }
   0xc   :  { %74 = vperm.xlu0 %327, %v40_v11   ;;  %64 = vperm.xlu1 %328, %v38_v12   ;;  %v22_v15 = vld [vmem:[%s530_s1 + $0x8] sm:$0xff]  ;;  %v34_v17 = vld [vmem:[%s531_s2] sm:$0xff]  ;;  %v27_v19 = vld [vmem:[%s530_s1 + $0x30] sm:$0xff]  ;;  %s374_s11 = smov 128   ;;  %s375_s12 = smov 8  }
   0xd   :  { %v35_v16 = vld [vmem:[%s531_s2 + $0x8] sm:$0xff]  ;;  %v167_v18 = vld [vmem:[%s533_s4] sm:$0xff]  ;;  %v23_v20 = vld [vmem:[%s530_s1 + $0x10] sm:$0xff] }
   0xe   :  { %v168_v21 = vld [vmem:[%s533_s4 + $0x8] sm:$0xff]  ;;  %v169_v22 = vld [vmem:[%s533_s4 + $0x10] sm:$0xff]  ;;  %v170_v23 = vld [vmem:[%s533_s4 + $0x18] sm:$0xff] }
   0xf   :  { %54 = vperm.xlu2 %329, %v36_v13   ;;  %v28_v24 = vld [vmem:[%s530_s1 + $0x38] sm:$0xff]  ;;  %v171_v26 = vld [vmem:[%s533_s4 + $0x20] sm:$0xff]  ;;  %v172_v27 = vld [vmem:[%s533_s4 + $0x28] sm:$0xff] }
  0x10   :  { %v24_v25 = vld [vmem:[%s530_s1 + $0x18] sm:$0xff]  ;;  %v173_v28 = vld [vmem:[%s533_s4 + $0x30] sm:$0x7f]  ;;  %v160_v60 = vld [vmem:[%s532_s3] sm:$0xff] }
  0x11   :  { %v164_v61 = vld [vmem:[%s532_s3 + $0x20] sm:$0xff]  ;;  %v161_v63 = vld [vmem:[%s532_s3 + $0x8] sm:$0xff]  ;;  %v162_v1 = vld [vmem:[%s532_s3 + $0x10] sm:$0xff] }
  0x12   :  { %v165_v0 = vld [vmem:[%s532_s3 + $0x28] sm:$0xff]  ;;  %v166_v2 = vld [vmem:[%s532_s3 + $0x30] sm:$0x7f]  ;;  %v163_v3 = vld [vmem:[%s532_s3 + $0x18] sm:$0xff]  ;;  %s373_s3 = smov [#allocation2]  }
  0x13   :  { %300 = vmatmul.msk.f32.gmra.mxu2 %vm82_vm1, %v26_v14  ;;  %296 = vmatmul.msk.f32.gmra.mxu0 %vm82_vm1, %v22_v15  ;;  %s280_s7 = sshll.u32 %s373_s3, 4  ;;  %s281_s7 = int_to_ptr.vmem [resolvable:$true] %s280_s7 }
  0x14   :  { %49 = vperm.xlu0 %327, %v35_v16   ;;  %44 = vperm.xlu1 %328, %v34_v17  }
  0x17   :  { %176 = vperm.xlu2 %329, %v167_v18  }
  0x1b   :  { %301 = vmatmul.msk.f32.gmra.mxu2 %vm82_vm1, %v27_v19  ;;  %297 = vmatmul.msk.f32.gmra.mxu0 %vm82_vm1, %v23_v20 }
  0x1c   :  { %181 = vperm.xlu0 %327, %v168_v21   ;;  %186 = vperm.xlu1 %328, %v169_v22  }
  0x1f   :  { %191 = vperm.xlu2 %329, %v170_v23  }
  0x23   :  { %302 = vmatmul.msk.f32.gmra.mxu2 %vm82_vm1, %v28_v24  ;;  %298 = vmatmul.msk.f32.gmra.mxu0 %vm82_vm1, %v24_v25 }
  0x24   :  { %196 = vperm.xlu0 %327, %v171_v26   ;;  %201 = vperm.xlu1 %328, %v172_v27  }
  0x27   :  { %206 = vperm.xlu2 %329, %v173_v28  }
  0x61   :  { %v60_v37 = vpop.permute.xlu2 %59 }
  0x69   :  { %v55_v47 = vpop.permute.xlu2 %54 }
  0x71   :  { %v177_v5 = vpop.permute.xlu2 %176 }
  0x75   :  { %v80_v33 = vpop.permute.xlu0 %79  ;;  %v70_v34 = vpop.permute.xlu1 %69 }
  0x79   :  { %v192_v14 = vpop.permute.xlu2 %191 }
  0x7e   :  { %v75_v38 = vpop.permute.xlu0 %74  ;;  %v65_v42 = vpop.permute.xlu1 %64 }
  0x81   :  { %v207_v20 = vpop.permute.xlu2 %206 }
  0x86   :  { %v50_v50 = vpop.permute.xlu0 %49  ;;  %v45_v53 = vpop.permute.xlu1 %44 }
  0x88   :  { %v128_v29 = vpop.f32.mrf.mxu0 }
  0x89   :  { %v129_v55 = vadd.f32 %v128_v29, %v45_v53 }
  0x8e   :  { %v140_v30 = vpop.f32.mrf.mxu2  ;;  %v182_v4 = vpop.permute.xlu0 %181 }
  0x8f   :  { %v141_v45 = vadd.f32 %v140_v30, %v65_v42  ;;  %v187_v8 = vpop.permute.xlu1 %186 }
  0x90   :  { %v131_v32 = vpop.f32.mrf.mxu0 }
  0x91   :  { %v132_v52 = vadd.f32 %v131_v32, %v50_v50 }
  0x96   :  { %v143_v31 = vpop.f32.mrf.mxu2  ;;  %v197_v9 = vpop.permute.xlu0 %196 }
  0x97   :  { %v144_v43 = vadd.f32 %v143_v31, %v70_v34  ;;  %v202_v15 = vpop.permute.xlu1 %201 }
  0x98   :  { %v134_v36 = vpop.f32.mrf.mxu0 }
  0x99   :  { %v135_v49 = vadd.f32 %v134_v36, %v55_v47 }
  0x9e   :  { %v146_v35 = vpop.f32.mrf.mxu2 }
  0x9f   :  { %v147_v40 = vadd.f32 %v146_v35, %v75_v38 }
  0xa0   :  { %v137_v44 = vpop.f32.mrf.mxu0 }
  0xa1   :  { %v138_v46 = vadd.f32 %v137_v44, %v60_v37 }
  0xa6   :  { %v149_v39 = vpop.f32.mrf.mxu2 }
  0xa7   :  { %v150_v41 = vadd.f32 %v149_v39, %v80_v33 }
  0xa9   :  { %330 = vtanh.f32 %v150_v41 }
  0xaa   :  { %332 = vtanh.f32 %v147_v40 }
  0xab   :  { %334 = vtanh.f32 %v144_v43 }
  0xac   :  { %336 = vtanh.f32 %v141_v45 }
  0xad   :  { %338 = vtanh.f32 %v138_v46 }
  0xae   :  { %340 = vtanh.f32 %v135_v49 }
  0xaf   :  { %v331_v48 = vpop.eup %330  ;;  %342 = vtanh.f32 %v132_v52 }
  0xb0   :  { %239 = vmatpush.msra.mxu1 %v331_v48  ;;  %315 = vmatpush.msra.mxu3 %v331_v48  ;;  %v333_v51 = vpop.eup %332  ;;  %344 = vtanh.f32 %v129_v55 }
  0xb1   :  { %v335_v54 = vpop.eup %334 }
  0xb2   :  { %240 = vmatpush.msra.mxu1 %v333_v51  ;;  %316 = vmatpush.msra.mxu3 %v333_v51  ;;  %v337_v56 = vpop.eup %336 }
  0xb3   :  { %v339_v57 = vpop.eup %338 }
  0xb4   :  { %241 = vmatpush.msra.mxu1 %v335_v54  ;;  %317 = vmatpush.msra.mxu3 %v335_v54  ;;  %v341_v58 = vpop.eup %340 }
  0xb5   :  { %v343_v59 = vpop.eup %342 }
  0xb6   :  { %242 = vmatpush.msra.mxu1 %v337_v56  ;;  %318 = vmatpush.msra.mxu3 %v337_v56  ;;  %v345_v62 = vpop.eup %344 }
  0xb8   :  { %243 = vmatpush.msra.mxu1 %v339_v57  ;;  %319 = vmatpush.msra.mxu3 %v339_v57 }
  0xba   :  { %244 = vmatpush.msra.mxu1 %v341_v58  ;;  %320 = vmatpush.msra.mxu3 %v341_v58 }
  0xbc   :  { %245 = vmatpush.msra.mxu1 %v343_v59  ;;  %321 = vmatpush.msra.mxu3 %v343_v59 }
  0xbe   :  { %246 = vmatpush.msra.mxu1 %v345_v62  ;;  %322 = vmatpush.msra.mxu3 %v345_v62 }
  0xbf   :  { %303 = vmatmul.msk.f32.vlgmr.msra.gmra.mxu1 %vm209_vm2, %v160_v60  ;;  %307 = vmatmul.msk.f32.vlgmr.msra.gmra.mxu3 %vm209_vm2, %v164_v61 }
  0xc7   :  { %304 = vmatmul.msk.f32.gmra.mxu1 %vm209_vm2, %v161_v63  ;;  %308 = vmatmul.msk.f32.gmra.mxu3 %vm209_vm2, %v165_v0 }
  0xcf   :  { %305 = vmatmul.msk.f32.gmra.mxu1 %vm209_vm2, %v162_v1  ;;  %309 = vmatmul.msk.f32.gmra.mxu3 %vm209_vm2, %v166_v2 }
  0xd7   :  { %306 = vmatmul.msk.f32.gmra.mxu1 %vm209_vm2, %v163_v3 }
 0x13c   :  { %v248_v6 = vpop.f32.mrf.mxu1 }
 0x13d   :  { %v249_v7 = vadd.f32 %v248_v6, %v177_v5 }
 0x13f   :  { %269 = vst [vmem:[#allocation2] sm:$0xff] %v249_v7 }
 0x142   :  { %v260_v10 = vpop.f32.mrf.mxu3 }
 0x143   :  { %v261_v11 = vadd.f32 %v260_v10, %v197_v9 }
 0x144   :  { %v251_v12 = vpop.f32.mrf.mxu1 }
 0x145   :  { %273 = vst [vmem:[#allocation2 + $0x20] sm:$0xff] %v261_v11  ;;  %v252_v13 = vadd.f32 %v251_v12, %v182_v4 }
 0x147   :  { %270 = vst [vmem:[#allocation2 + $0x8] sm:$0xff] %v252_v13 }
 0x14a   :  { %v263_v16 = vpop.f32.mrf.mxu3 }
 0x14b   :  { %v264_v17 = vadd.f32 %v263_v16, %v202_v15 }
 0x14c   :  { %v254_v18 = vpop.f32.mrf.mxu1 }
 0x14d   :  { %274 = vst [vmem:[#allocation2 + $0x28] sm:$0xff] %v264_v17  ;;  %v255_v19 = vadd.f32 %v254_v18, %v187_v8 }
 0x14f   :  { %271 = vst [vmem:[#allocation2 + $0x10] sm:$0xff] %v255_v19 }
 0x152   :  { %v266_v21 = vpop.f32.mrf.mxu3 }
 0x153   :  { %v267_v22 = vadd.f32 %v266_v21, %v207_v20 }
 0x154   :  { %v257_v23 = vpop.f32.mrf.mxu1 }
 0x155   :  { %275 = vst [vmem:[#allocation2 + $0x30] sm:$0x7f] %v267_v22  ;;  %v258_v24 = vadd.f32 %v257_v23, %v192_v14 }
 0x157   :  { %272 = vst [vmem:[#allocation2 + $0x18] sm:$0xff] %v258_v24 }
 0x158   :  { %288 = dma.vmem_to_hbm [thread:$0]  %s281_s7, 896, %s283_s10, [#allocation3], %s374_s11, %s374_s11, %s375_s12  }
 0x159   :  { %370 = dma.done.wait [#allocation3], 896  }
 0x15a   :  { %371 = vsyncadd [#allocation3], 4294966400 }
 0x15b   :  { %293 = vsyncpa [#allocation3], 1 }

</bundles_post_ra>
